<compile_context>
chip_gen: v6e
topology: v6e:2x2x1
jax: 0.10.0
libtpu: 0.0.40
codegen_flags: <defaults>
</compile_context>

<pallas_src>
import jax
import jax.numpy as jnp
from jax import lax
from jax.experimental import pallas as pl
from jax.experimental.pallas import tpu as pltpu

_LANES = 128  # lane width of a vreg


def _round_up(n, m):
    return ((n + m - 1) // m) * m


def kappa_mlp_kernel(x_ref, w1_ref, b1_ref, w2t_ref, b2_ref, o_ref):
    # x_ref  : (tb, D)  f32      w1_ref : (D, Hp)  bf16     b1_ref : (1, Hp) f32
    # w2t_ref: (O, Hp)  f32      b2_ref : (O, 1)   f32
    # o_ref  : (O, tb)  f32      (Hp multiple of 128, tb multiple of 128, O = 3)
    #
    # Layer 1: cast x to bf16 in-register (free, hidden under the DMA) and run a
    # bf16 MXU matmul with f32 accumulation; bias + ReLU stay in f32 vregs
    # (v5e-safe: no bf16 VPU math).
    x_bf16 = x_ref[...].astype(jnp.bfloat16)
    h = jnp.dot(x_bf16, w1_ref[...], preferred_element_type=jnp.float32)
    h = jnp.maximum(h + b1_ref[...], 0.0)

    # Layer 2, directly in transposed form: contract w2^T (O, Hp) with h (tb, Hp)
    # over Hp -> (O, tb).  Output stores are full-lane (tb multiple of 128).
    y = lax.dot_general(w2t_ref[...], h, (((1,), (1,)), ((), ())),
                        preferred_element_type=jnp.float32)
    o_ref[...] = y + b2_ref[...]


def kappa_net_forward(x, w1, b1, w2, b2, *, block_b=2048):
    """Fused MLP forward.  x: (B, D) f32 -> (B, 3) f32.

    block_b guidance: ~1024-2048 on v5e, 2048-4096 on v6e, 4096+ on v7x
    (per-step x traffic is tiny, so bigger tiles amortize grid-step overhead;
    keep >= 2 grid steps if you want megacore sharding on v7x).
    """
    x = jnp.asarray(x, jnp.float32)
    B, D = x.shape
    H = w1.shape[1]
    O = w2.shape[1]

    # Hidden dim zero-padded to a lane-dense multiple of 128 (zeros are exact
    # no-ops for both the ReLU and the layer-2 contraction).
    Hp = _round_up(max(H, _LANES), _LANES)

    # Batch tile: multiple of 128 so the output lane dim is dense.  The grid is
    # cdiv over the *un-padded* batch; Pallas pads the ragged last x block and
    # the garbage columns land in the padded output tail (sliced off below).
    tb = _round_up(min(block_b, _round_up(B, _LANES)), _LANES)
    grid = (pl.cdiv(B, tb),)
    Bp = grid[0] * tb  # padded output width -> every output store is full-lane

    # Weights / biases: tiny one-time packing (no copy of x).
    w1_p = jnp.zeros((D, Hp), jnp.bfloat16).at[:, :H].set(w1.astype(jnp.bfloat16))
    b1_p = jnp.zeros((1, Hp), jnp.float32).at[:, :H].set(jnp.reshape(b1, (1, H)))
    w2t_p = jnp.zeros((O, Hp), jnp.float32).at[:, :H].set(jnp.asarray(w2, jnp.float32).T)
    b2_p = jnp.reshape(jnp.asarray(b2, jnp.float32), (O, 1))

    cost = pl.CostEstimate(
        flops=2 * Bp * (D * Hp + Hp * O),
        transcendentals=0,
        bytes_accessed=(B * D * 4          # x (f32, read once)
                        + D * Hp * 2       # w1 (bf16)
                        + Hp * 4           # b1
                        + O * Hp * 4       # w2^T
                        + O * 4            # b2
                        + O * Bp * 4),     # transposed output (f32)
    )

    out_t = pl.pallas_call(
        kappa_mlp_kernel,
        out_shape=jax.ShapeDtypeStruct((O, Bp), jnp.float32),
        grid=grid,
        in_specs=[
            pl.BlockSpec((tb, D), lambda i: (i, 0)),   # x tile (pipelined)
            pl.BlockSpec((D, Hp), lambda i: (0, 0)),   # w1 (resident)
            pl.BlockSpec((1, Hp), lambda i: (0, 0)),   # b1
            pl.BlockSpec((O, Hp), lambda i: (0, 0)),   # w2^T (resident)
            pl.BlockSpec((O, 1), lambda i: (0, 0)),    # b2
        ],
        out_specs=pl.BlockSpec((O, tb), lambda i: (0, i)),  # lane-dense (3, tb)
        compiler_params=pltpu.CompilerParams(
            dimension_semantics=("parallel",),   # batch axis -> megacore shard
            vmem_limit_bytes=32 * 1024 * 1024,   # explicit, v7x-safe; tiles are
                                                 # only a few MiB even at tb=4096
        ),
        cost_estimate=cost,
    )(x, w1_p, b1_p, w2t_p, b2_p)

    # Drop the padded batch tail and restore (B, 3) row-major (tiny transpose).
    return out_t[:, :B].T
    # TODO(synk): if the production batch is only ~8 rows, fuse this MLP into
    # its caller instead of paying standalone pallas_call overhead.


def init_params(key, in_dim, hidden=64, out_dim=3):
    """Deterministic init mimicking torch.nn.Linear's U(-1/sqrt(fan_in), ...)."""
    k1, k2, k3, k4 = jax.random.split(key, 4)
    lim1 = 1.0 / jnp.sqrt(in_dim)
    lim2 = 1.0 / jnp.sqrt(hidden)
    w1 = jax.random.uniform(k1, (in_dim, hidden), jnp.float32, -lim1, lim1)
    b1 = jax.random.uniform(k2, (hidden,), jnp.float32, -lim1, lim1)
    w2 = jax.random.uniform(k3, (hidden, out_dim), jnp.float32, -lim2, lim2)
    b2 = jax.random.uniform(k4, (out_dim,), jnp.float32, -lim2, lim2)
    return w1, b1, w2, b2


if __name__ == "__main__":
    key = jax.random.PRNGKey(0)
    kx, kp = jax.random.split(key)

    # Ragged batch (not a multiple of the tile) + small block_b so the grid has
    # several steps, exercising the ragged last input block, pipelining, and
    # the transposed lane-dense output.
    B, in_dim, hidden = 300, 32, 64
    x = jax.random.normal(kx, (B, in_dim), jnp.float32)
    w1, b1, w2, b2 = init_params(kp, in_dim, hidden)

    out = kappa_net_forward(x, w1, b1, w2, b2, block_b=256)
    out = jax.block_until_ready(out)

    # Reference with the same bf16 rounding of x / W1 that the kernel applies.
    xb = x.astype(jnp.bfloat16).astype(jnp.float32)
    w1b = w1.astype(jnp.bfloat16).astype(jnp.float32)
    ref = jnp.maximum(xb @ w1b + b1[None, :], 0.0) @ w2 + b2[None, :]

    assert out.shape == (B, 3), out.shape
    max_err = float(jnp.max(jnp.abs(out - ref)))
    assert jnp.allclose(out, ref, atol=2e-2, rtol=2e-2), max_err

    print("KERNEL_OK")
</pallas_src>

<mosaic_0001>
module attributes {stable_mosaic.version = 11 : i64} {
  func.func @kappa_mlp_kernel(%arg0: i32, %arg1: memref<256x32xf32, #tpu.memory_space<vmem>>, %arg2: memref<32x128xbf16, #tpu.memory_space<vmem>>, %arg3: memref<1x128xf32, #tpu.memory_space<vmem>>, %arg4: memref<3x128xf32, #tpu.memory_space<vmem>>, %arg5: memref<3x1xf32, #tpu.memory_space<vmem>>, %arg6: memref<3x256xf32, #tpu.memory_space<vmem>>) attributes {dimension_semantics = [#tpu.dimension_semantics<parallel>], iteration_bounds = array<i64: 2>, scalar_prefetch = 0 : i64, scratch_operands = 0 : i64, tpu.core_type = #tpu.core_type<tc>, window_params = [{transform_indices = @transform_0, window_bounds = array<i64: 256, 32>}, {pipeline_mode = #tpu.pipeline_mode<synchronous>, transform_indices = @transform_1, window_bounds = array<i64: 32, 128>}, {pipeline_mode = #tpu.pipeline_mode<synchronous>, transform_indices = @transform_2, window_bounds = array<i64: 1, 128>}, {pipeline_mode = #tpu.pipeline_mode<synchronous>, transform_indices = @transform_3, window_bounds = array<i64: 3, 128>}, {pipeline_mode = #tpu.pipeline_mode<synchronous>, transform_indices = @transform_4, window_bounds = array<i64: 3, 1>}, {transform_indices = @transform_5, window_bounds = array<i64: 3, 256>}]} {
    %c0 = arith.constant 0 : index
    %c0_0 = arith.constant 0 : index
    %0 = vector.load %arg1[%c0, %c0_0] : memref<256x32xf32, #tpu.memory_space<vmem>>, vector<256x32xf32>
    %1 = arith.truncf %0 : vector<256x32xf32> to vector<256x32xbf16>
    %c0_1 = arith.constant 0 : index
    %c0_2 = arith.constant 0 : index
    %2 = vector.load %arg2[%c0_1, %c0_2] : memref<32x128xbf16, #tpu.memory_space<vmem>>, vector<32x128xbf16>
    %cst = arith.constant dense<0.000000e+00> : vector<256x128xf32>
    %3 = tpu.matmul %1, %2, %cst {dimension_numbers = #tpu.dot_dimension_numbers<[1], [0], [0], [1], [0, 0, 1, 1], [], []>} : vector<256x32xbf16>, vector<32x128xbf16>, vector<256x128xf32> -> vector<256x128xf32>
    %c0_3 = arith.constant 0 : index
    %c0_4 = arith.constant 0 : index
    %4 = vector.load %arg3[%c0_3, %c0_4] : memref<1x128xf32, #tpu.memory_space<vmem>>, vector<1x128xf32>
    %5 = vector.broadcast %4 : vector<1x128xf32> to vector<256x128xf32>
    %6 = arith.addf %3, %5 : vector<256x128xf32>
    %cst_5 = arith.constant 0.000000e+00 : f32
    %7 = vector.broadcast %cst_5 : f32 to vector<256x128xf32>
    %8 = arith.maximumf %6, %7 : vector<256x128xf32>
    %c0_6 = arith.constant 0 : index
    %c0_7 = arith.constant 0 : index
    %9 = vector.load %arg4[%c0_6, %c0_7] : memref<3x128xf32, #tpu.memory_space<vmem>>, vector<3x128xf32>
    %cst_8 = arith.constant dense<0.000000e+00> : vector<3x256xf32>
    %10 = tpu.matmul %9, %8, %cst_8 {dimension_numbers = #tpu.dot_dimension_numbers<[1], [1], [0], [0], [0, 0, 1, 0], [], []>} : vector<3x128xf32>, vector<256x128xf32>, vector<3x256xf32> -> vector<3x256xf32>
    %c0_9 = arith.constant 0 : index
    %c0_10 = arith.constant 0 : index
    %11 = vector.load %arg5[%c0_9, %c0_10] : memref<3x1xf32, #tpu.memory_space<vmem>>, vector<3x1xf32>
    %12 = vector.broadcast %11 : vector<3x1xf32> to vector<3x256xf32>
    %13 = arith.addf %10, %12 : vector<3x256xf32>
    %c0_11 = arith.constant 0 : index
    %c0_12 = arith.constant 0 : index
    %14 = vector.load %arg6[%c0_11, %c0_12] : memref<3x256xf32, #tpu.memory_space<vmem>>, vector<3x256xf32>
    tpu.vector_store %arg6[%c0_11, %c0_12], %13 {strides = array<i32>} : memref<3x256xf32, #tpu.memory_space<vmem>>, vector<3x256xf32>,
    return
  }
  func.func @transform_0(%arg0: i32) -> (i32, i32) {
    %c0_i32 = arith.constant 0 : i32
    %c0_i32_0 = arith.constant 0 : i32
    return %arg0, %c0_i32 : i32, i32
  }
  func.func @transform_1(%arg0: i32) -> (i32, i32) {
    %c0_i32 = arith.constant 0 : i32
    %c0_i32_0 = arith.constant 0 : i32
    %c0_i32_1 = arith.constant 0 : i32
    return %c0_i32, %c0_i32_0 : i32, i32
  }
  func.func @transform_2(%arg0: i32) -> (i32, i32) {
    %c0_i32 = arith.constant 0 : i32
    %c0_i32_0 = arith.constant 0 : i32
    %c0_i32_1 = arith.constant 0 : i32
    return %c0_i32, %c0_i32_0 : i32, i32
  }
  func.func @transform_3(%arg0: i32) -> (i32, i32) {
    %c0_i32 = arith.constant 0 : i32
    %c0_i32_0 = arith.constant 0 : i32
    %c0_i32_1 = arith.constant 0 : i32
    return %c0_i32, %c0_i32_0 : i32, i32
  }
  func.func @transform_4(%arg0: i32) -> (i32, i32) {
    %c0_i32 = arith.constant 0 : i32
    %c0_i32_0 = arith.constant 0 : i32
    %c0_i32_1 = arith.constant 0 : i32
    return %c0_i32, %c0_i32_0 : i32, i32
  }
  func.func @transform_5(%arg0: i32) -> (i32, i32) {
    %c0_i32 = arith.constant 0 : i32
    %c0_i32_0 = arith.constant 0 : i32
    return %c0_i32, %arg0 : i32, i32
  }
}

</mosaic_0001>

<bundles_post_ra>
// kernel: tpu_custom_call.1
= control target key start
LH: loop header
LB: loop body
LE: loop exit
PB: predicated region body
PF: predicated region fallthrough
CT: control target
= control target key end

     0   :  { %10 = vsyncpa [#allocation3], 0  ;;  %s1208_s0 = inlined_call_operand.vmem [shape: f32[300,32], index: 0, kind: input, shape index: {}]   ;;  %s1209_s1 = inlined_call_operand.vmem [shape: bf16[32,128], index: 1, kind: input, shape index: {}]   ;;  %s1210_s2 = inlined_call_operand.vmem [shape: f32[1,128], index: 2, kind: input, shape index: {}]   ;;  %s1211_s3 = inlined_call_operand.vmem [shape: f32[3,128], index: 3, kind: input, shape index: {}]   ;;  %s1212_s4 = inlined_call_operand.vmem [shape: f32[3,1], index: 4, kind: input, shape index: {}]   ;;  %s1213_s5 = inlined_call_operand.hbm [shape: f32[3,512], index: 5, kind: output, shape index: {}]  }
   0x1   :  { %12 = vsyncpa [#allocation3 + $0x1], 0  ;;  %s974_s18 = smov 0   ;;  %s976_s19 = smov 0  }
   0x2   :  { %s978_s20 = smov 0   ;;  %s980_s21 = smov 0  }
   0x3 LB: > { %s995_s22 = sadd.s32 4294967295, %s940_s21   ;;  %s717_s23 = sadd.s32 4294967294, %s940_s21   ;;  %s940_s21 = sphi %s980_s21, %s1219_s21   ;;  %s936_s20 = sphi %s978_s20, %s1218_s20   ;;  %s932_s19 = sphi %s976_s19, %s1217_s19   ;;  %s928_s18 = sphi %s974_s18, %s1216_s18  }
   0x4   : > { %s999_s24 = sadd.s32 1, %s940_s21   ;;  %s135_s25 = sadd.s32 1, %s936_s20 }
   0x5   : > { %s132_s26 = ssub.s32 %s940_s21, %s999_s24  ;;  %p145_p0 = scmp.ne.s32.totalorder %s936_s20, %s932_s19 }
   0x6   : > { %p133_p1 = scmp.eq.s32.totalorder %s132_s26, 0  ;;  %p146_p2 = scmp.eq.s32.totalorder %s995_s22, 1 }
   0x7   : > { %p151_p3 = scmp.ne.s32.totalorder %s932_s19, %s928_s18  ;;  %p152_p4 = scmp.eq.s32.totalorder %s717_s23, 1 }
   0x8   : > { %s1010_s27 = scalar_select %p133_p1, %s936_s20, %s135_s25  }
   0x9   : > { %p1012_p5 = por %p146_p2, %p145_p0  ;;  %p1016_p6 = por %p152_p4, %p151_p3 }
   0xa   : > { %p720_p7 = scmp.ge.s32.totalorder %s940_s21, 1  ;;  %p199_p8 = scmp.lt.s32.totalorder %s940_s21, 3 }
   0xc   : > { %p200_p9 = pnand %p720_p7, %p199_p8 }
   0xd   : > { %s722_s7 = sshll.u32 (!%p200_p9), %s995_s22, 5  ;;  %s228_s26 = sand.u32 (!%p200_p9), 1, %s932_s19  }
   0xe   : > { %203 = sbr.rel (%p200_p9) target bundleno = 561 (0x231), region = 40  ;;  %p236_p10 = scmp.lt.s32.totalorder (!%p200_p9), %s722_s7, 37 }
   0xf   : > { %s721_s30 = sshll.u32 (!%p200_p9), %s228_s26, 3  ;;  %s748_s6 = sshll.u32 (!%p200_p9), %s995_s22, 7 }
  0x10   : > { %s656_s11 = scalar_lea.hbm (!%p200_p9), %s1213_s5, %s748_s6  ;;  %s644_s12 = scalar_lea.sflag (!%p200_p9), [#allocation3], %s228_s26 }
  0x11   : > { %s943_s14 = smov (!%p200_p9), [#allocation2]  }
  0x12   : > { %s884_s15 = sshll.u32 (!%p200_p9), %s943_s14, 4  ;;  %s885_s15 = int_to_ptr.vmem [resolvable:$false] %s884_s15 }
  0x13   : > { %v878_v0 = vld [vmem:[%s1209_s1 + $0x8] sm:$0xff]   ;;  %v879_v1 = vld [vmem:[%s1209_s1] sm:$0xff]   ;;  %s1221_s7 = smov (!%p236_p10, %s722_s7), 37  ;;  %vm318_vm0 = vcmask 261120   ;;  %v942_v54 = vmov 0   ;;  %s886_s22 = scalar_lea.vmem %s885_s15, 256 }
  0x14   : > { %801 = vmatprep.subr.bf16.mxu0 %v878_v0  ;;  %s723_s10 = sshll.u32 %s1221_s7, 3  ;;  %v1085_v50 = vld [vmem:[%s1211_s3] sm:$0x7]  ;;  %877 = vset.pattern.permute.xlu0 %v942_v54  ;;  %s230_s7 = scalar_lea.vmem [#allocation2], %s721_s30 }
  0x15   : > { %802 = vmatpush3.bf16.msra.mxu0 %v878_v0  ;;  %s1032_s13 = scalar_lea.vmem %s1208_s0, %s723_s10  ;;  %799 = vmatprep.mubr.f32.mxu1 %v1085_v50  ;;  %v561_v52 = vld [vmem:[%s1212_s4] sm:$0x7]  ;;  %s658_s8 = sshll.u32 %s230_s7, 4  ;;  %s659_s8 = int_to_ptr.vmem [resolvable:$true] %s658_s8 }
  0x16   : > { %803 = vmatprep.subr.bf16.mxu0 %v879_v1  ;;  %v247_v2 = vld [vmem:[%s1032_s13] sm:$0xff]  ;;  %v248_v3 = vld [vmem:[%s1032_s13 + $0x8] sm:$0xff]  ;;  %v249_v4 = vld [vmem:[%s1032_s13 + $0x10] sm:$0xff]  ;;  %564 = vperm.xlu0 %877, %v561_v52   ;;  %p887_p0 = scmp.lt.s32.totalorder %s659_s8, %s885_s15 }
  0x17   : > { %v279_v5 = vpack.c.bf16 %v248_v3, %v247_v2  ;;  %v250_v6 = vld [vmem:[%s1032_s13 + $0x18] sm:$0xff]  ;;  %v251_v7 = vld [vmem:[%s1032_s13 + $0x20] sm:$0xff]  ;;  %v252_v8 = vld [vmem:[%s1032_s13 + $0x28] sm:$0xff] }
  0x18   : > { %v280_v9 = vpack.c.bf16 %v250_v6, %v249_v4  ;;  %v281_v10 = vpack.c.bf16 %v252_v8, %v251_v7  ;;  %v253_v11 = vld [vmem:[%s1032_s13 + $0x30] sm:$0xff]  ;;  %v254_v12 = vld [vmem:[%s1032_s13 + $0x38] sm:$0xff]  ;;  %v255_v13 = vld [vmem:[%s1032_s13 + $0x40] sm:$0xff] }
  0x19   : > { %804 = vmatpush3.bf16.msra.mxu0 %v879_v1  ;;  %805 = vmatprep.mubr.msk.bf16.mxu0 %vm318_vm0, %v279_v5  ;;  %v256_v14 = vld [vmem:[%s1032_s13 + $0x48] sm:$0xff]  ;;  %v282_v15 = vpack.c.bf16 %v254_v12, %v253_v11  ;;  %v257_v17 = vld [vmem:[%s1032_s13 + $0x50] sm:$0xff]  ;;  %v258_v18 = vld [vmem:[%s1032_s13 + $0x58] sm:$0xff] }
  0x1a   : > { %v283_v16 = vpack.c.bf16 %v256_v14, %v255_v13  ;;  %v259_v19 = vld [vmem:[%s1032_s13 + $0x60] sm:$0xff]  ;;  %v260_v20 = vld [vmem:[%s1032_s13 + $0x68] sm:$0xff]  ;;  %v284_v21 = vpack.c.bf16 %v258_v18, %v257_v17  ;;  %v261_v23 = vld [vmem:[%s1032_s13 + $0x70] sm:$0xff] }
  0x1b   : > { %v285_v22 = vpack.c.bf16 %v260_v20, %v259_v19  ;;  %v262_v24 = vld [vmem:[%s1032_s13 + $0x78] sm:$0xff]  ;;  %v263_v25 = vld [vmem:[%s1032_s13 + $0x80] sm:$0xff]  ;;  %v264_v26 = vld [vmem:[%s1032_s13 + $0x88] sm:$0xff] }
  0x1c   : > { %806 = vmatmul.mubr.msk.bf16.vlgmr.msra.gmra.mxu0 %vm318_vm0, %v280_v9  ;;  %v286_v27 = vpack.c.bf16 %v262_v24, %v261_v23  ;;  %v287_v28 = vpack.c.bf16 %v264_v26, %v263_v25  ;;  %v265_v29 = vld [vmem:[%s1032_s13 + $0x90] sm:$0xff]  ;;  %v266_v30 = vld [vmem:[%s1032_s13 + $0x98] sm:$0xff]  ;;  %v267_v31 = vld [vmem:[%s1032_s13 + $0xa0] sm:$0xff] }
  0x1d   : > { %809 = vmatprep.mubr.msk.bf16.mxu0 %vm318_vm0, %v281_v10  ;;  %v268_v32 = vld [vmem:[%s1032_s13 + $0xa8] sm:$0xff]  ;;  %v288_v33 = vpack.c.bf16 %v266_v30, %v265_v29  ;;  %v269_v35 = vld [vmem:[%s1032_s13 + $0xb0] sm:$0xff]  ;;  %v270_v36 = vld [vmem:[%s1032_s13 + $0xb8] sm:$0xff] }
  0x1e   : > { %v289_v34 = vpack.c.bf16 %v268_v32, %v267_v31  ;;  %v271_v37 = vld [vmem:[%s1032_s13 + $0xc0] sm:$0xff]  ;;  %v272_v38 = vld [vmem:[%s1032_s13 + $0xc8] sm:$0xff]  ;;  %v290_v39 = vpack.c.bf16 %v270_v36, %v269_v35  ;;  %v273_v41 = vld [vmem:[%s1032_s13 + $0xd0] sm:$0xff] }
  0x1f   : > { %v291_v40 = vpack.c.bf16 %v272_v38, %v271_v37  ;;  %v274_v42 = vld [vmem:[%s1032_s13 + $0xd8] sm:$0xff]  ;;  %v275_v43 = vld [vmem:[%s1032_s13 + $0xe0] sm:$0xff]  ;;  %v276_v44 = vld [vmem:[%s1032_s13 + $0xe8] sm:$0xff] }
  0x20   : > { %v292_v45 = vpack.c.bf16 %v274_v42, %v273_v41  ;;  %v293_v46 = vpack.c.bf16 %v276_v44, %v275_v43  ;;  %v277_v47 = vld [vmem:[%s1032_s13 + $0xf0] sm:$0xff]  ;;  %v278_v48 = vld [vmem:[%s1032_s13 + $0xf8] sm:$0xff]  ;;  %v1124_v19 = vld [vmem:[%s1210_s2] ss:$0 sm:$0xff]  ;;  %s880_s13 = scalar_lea.vmem %s659_s8, 128 }
  0x21   : > { %v294_v49 = vpack.c.bf16 %v278_v48, %v277_v47  ;;  %p881_p11 = scmp.ne.s32.totalorder %s659_s8, %s880_s13  ;;  %p888_p1 = scmp.lt.s32.totalorder %s886_s22, %s880_s13 }
  0x23   : > { %p882_p12 = pnand %p881_p11, %p1012_p5  ;;  %p889_p2 = por %p888_p1, %p887_p0 }
  0x24   : > { %810 = vmatmul.mubr.msk.bf16.gmra.mxu0 %vm318_vm0, %v282_v15 }
  0x25   : > { %813 = vmatprep.mubr.msk.bf16.mxu0 %vm318_vm0, %v283_v16  ;;  %p883_p13 = pneg %p882_p12 }
  0x27   : > { %p890_p3 = pnand %p889_p2, %p883_p13 }
  0x2c   : > { %814 = vmatmul.mubr.msk.bf16.gmra.mxu0 %vm318_vm0, %v284_v21 }
  0x2d   : > { %817 = vmatprep.mubr.msk.bf16.mxu0 %vm318_vm0, %v285_v22 }
  0x34   : > { %818 = vmatmul.mubr.msk.bf16.gmra.mxu0 %vm318_vm0, %v286_v27 }
  0x35   : > { %821 = vmatprep.mubr.msk.bf16.mxu0 %vm318_vm0, %v287_v28 }
  0x3c   : > { %822 = vmatmul.mubr.msk.bf16.gmra.mxu0 %vm318_vm0, %v288_v33 }
  0x3d   : > { %825 = vmatprep.mubr.msk.bf16.mxu0 %vm318_vm0, %v289_v34 }
  0x44   : > { %826 = vmatmul.mubr.msk.bf16.gmra.mxu0 %vm318_vm0, %v290_v39 }
  0x45   : > { %829 = vmatprep.mubr.msk.bf16.mxu0 %vm318_vm0, %v291_v40 }
  0x4c   : > { %830 = vmatmul.mubr.msk.bf16.gmra.mxu0 %vm318_vm0, %v292_v45 }
  0x4d   : > { %833 = vmatprep.mubr.msk.bf16.mxu0 %vm318_vm0, %v293_v46 }
  0x54   : > { %834 = vmatmul.mubr.msk.bf16.gmra.mxu0 %vm318_vm0, %v294_v49 }
  0xdc   : > { %v1088_v51 = vpop.f32.mrf.mxu0 }
  0xde   : > { %v1093_v53 = vpop.f32.mrf.mxu0 }
  0xe0   : > { %v1095_v55 = vpop.f32.mrf.mxu0 }
  0xe2   : > { %v1097_v56 = vpop.f32.mrf.mxu0 }
  0xe4   : > { %v1099_v57 = vpop.f32.mrf.mxu0 }
  0xe6   : > { %v1101_v58 = vpop.f32.mrf.mxu0 }
  0xe8   : > { %v1103_v59 = vpop.f32.mrf.mxu0 }
  0xea   : > { %v1105_v60 = vpop.f32.mrf.mxu0 }
  0xec   : > { %v815_v61 = vpop.f32.mrf.mxu0 }
  0xed   : > { %v442_v42 = vadd.f32 %v815_v61, %v1124_v19 }
  0xee   : > { %v1107_v62 = vpop.f32.mrf.mxu0 }
  0xef   : > { %v538_v46 = vmax.f32 %v442_v42, 0.0  ;;  %v434_v52 = vadd.f32 %v1124_v19, %v1107_v62 }
  0xf0   : > { %v816_v63 = vpop.f32.mrf.mxu0 }
  0xf1   : > { %v445_v38 = vadd.f32 %v816_v63, %v1124_v19 }
  0xf2   : > { %v436_v0 = vpop.f32.mrf.mxu0 }
  0xf3   : > { %v539_v43 = vmax.f32 %v445_v38, 0.0  ;;  %v437_v47 = vadd.f32 %v1124_v19, %v436_v0 }
  0xf4   : > { %v819_v1 = vpop.f32.mrf.mxu0 }
  0xf5   : > { %v458_v26 = vadd.f32 %v819_v1, %v1124_v19  ;;  %v537_v54 = vmax.f32 %v437_v47, 0.0  ;;  %v429_v1 = vadd.f32 %v1103_v59, %v1124_v19  ;;  %v421_v59 = vadd.f32 %v1124_v19, %v1105_v60 }
  0xf6   : > { %v449_v2 = vpop.f32.mrf.mxu0 }
  0xf7   : > { %v542_v30 = vmax.f32 %v458_v26, 0.0  ;;  %v450_v34 = vadd.f32 %v1124_v19, %v449_v2  ;;  %v536_v2 = vmax.f32 %v434_v52, 0.0 }
  0xf8   : > { %v820_v3 = vpop.f32.mrf.mxu0 }
  0xf9   : > { %v461_v20 = vadd.f32 %v820_v3, %v1124_v19  ;;  %v540_v39 = vmax.f32 %v450_v34, 0.0 }
  0xfa   : > { %v452_v4 = vpop.f32.mrf.mxu0 }
  0xfb   : > { %v543_v27 = vmax.f32 %v461_v20, 0.0  ;;  %v453_v31 = vadd.f32 %v1124_v19, %v452_v4  ;;  %v426_v4 = vadd.f32 %v1099_v57, %v1124_v19  ;;  %v418_v57 = vadd.f32 %v1124_v19, %v1101_v58 }
  0xfc   : > { %v1109_v5 = vpop.f32.mrf.mxu0  ;;  %v410_v58 = vadd.f32 %v1088_v51, %v1124_v19  ;;  %v402_v51 = vadd.f32 %v1124_v19, %v1093_v53 }
  0xfd   : > { %v541_v35 = vmax.f32 %v453_v31, 0.0  ;;  %v532_v60 = vmax.f32 %v418_v57, 0.0 }
  0xfe   : > { %v1111_v6 = vpop.f32.mrf.mxu0 }
 0x100   : > { %v1113_v7 = vpop.f32.mrf.mxu0 }
 0x102   : > { %v1115_v8 = vpop.f32.mrf.mxu0 }
 0x104   : > { %v827_v9 = vpop.f32.mrf.mxu0 }
 0x105   : > { %v490_v0 = vadd.f32 %v827_v9, %v1124_v19 }
 0x106   : > { %v1117_v10 = vpop.f32.mrf.mxu0 }
 0x107   : > { %v550_v62 = vmax.f32 %v490_v0, 0.0  ;;  %v482_v9 = vadd.f32 %v1124_v19, %v1117_v10  ;;  %v474_v10 = vadd.f32 %v1109_v5, %v1124_v19  ;;  %v466_v5 = vadd.f32 %v1124_v19, %v1111_v6 }
 0x108   : > { %v828_v11 = vpop.f32.mrf.mxu0 }
 0x109   : > { %v493_v61 = vadd.f32 %v828_v11, %v1124_v19  ;;  %v544_v26 = vmax.f32 %v466_v5, 0.0 }
 0x10a   : > { %v1119_v12 = vpop.f32.mrf.mxu0 }
 0x10b   : > { %v551_v3 = vmax.f32 %v493_v61, 0.0  ;;  %v485_v11 = vadd.f32 %v1124_v19, %v1119_v12  ;;  %v548_v12 = vmax.f32 %v482_v9, 0.0 }
 0x10c   : > { %v831_v13 = vpop.f32.mrf.mxu0 }
 0x10d   : > { %v506_v40 = vadd.f32 %v831_v13, %v1124_v19  ;;  %v535_v13 = vmax.f32 %v429_v1, 0.0 }
 0x10e   : > { %v497_v14 = vpop.f32.mrf.mxu0 }
 0x10f   : > { %v554_v44 = vmax.f32 %v506_v40, 0.0  ;;  %v498_v48 = vadd.f32 %v1124_v19, %v497_v14  ;;  %v534_v14 = vmax.f32 %v426_v4, 0.0 }
 0x110   : > { %v832_v15 = vpop.f32.mrf.mxu0 }
 0x111   : > { %v509_v36 = vadd.f32 %v832_v15, %v1124_v19  ;;  %v552_v63 = vmax.f32 %v498_v48, 0.0  ;;  %v549_v15 = vmax.f32 %v485_v11, 0.0 }
 0x112   : > { %v500_v16 = vpop.f32.mrf.mxu0 }
 0x113   : > { %v555_v41 = vmax.f32 %v509_v36, 0.0  ;;  %v501_v45 = vadd.f32 %v1124_v19, %v500_v16  ;;  %v533_v16 = vmax.f32 %v421_v59, 0.0 }
 0x114   : > { %v835_v17 = vpop.f32.mrf.mxu0 }
 0x115   : > { %v522_v22 = vadd.f32 %v835_v17, %v1124_v19  ;;  %v553_v49 = vmax.f32 %v501_v45, 0.0  ;;  %v477_v17 = vadd.f32 %v1113_v7, %v1124_v19  ;;  %v469_v7 = vadd.f32 %v1124_v19, %v1115_v8 }
 0x116   : > { %v513_v18 = vpop.f32.mrf.mxu0  ;;  %v528_v8 = vmax.f32 %v402_v51, 0.0 }
 0x117   : > { %v558_v28 = vmax.f32 %v522_v22, 0.0  ;;  %v514_v32 = vadd.f32 %v1124_v19, %v513_v18  ;;  %v413_v18 = vadd.f32 %v1095_v55, %v1124_v19  ;;  %v547_v20 = vmax.f32 %v477_v17, 0.0 }
 0x118   : > { %v836_v21 = vpop.f32.mrf.mxu0  ;;  %v546_v22 = vmax.f32 %v474_v10, 0.0  ;;  %v405_v55 = vadd.f32 %v1124_v19, %v1097_v56  ;;  %v565_v56 = vpop.permute.xlu0 %564 }
 0x119   : > { %v525_v23 = vadd.f32 %v836_v21, %v1124_v19  ;;  %v556_v37 = vmax.f32 %v514_v32, 0.0  ;;  %v531_v21 = vmax.f32 %v413_v18, 0.0 }
 0x11a   : > { %v516_v24 = vpop.f32.mrf.mxu0 }
 0x11b   : > { %v559_v25 = vmax.f32 %v525_v23, 0.0  ;;  %v517_v29 = vadd.f32 %v1124_v19, %v516_v24  ;;  %v530_v23 = vmax.f32 %v410_v58, 0.0  ;;  %v545_v24 = vmax.f32 %v469_v7, 0.0 }
 0x11d   : > { %767 = vmatprep.subr.mxu1 %v559_v25  ;;  %v557_v33 = vmax.f32 %v517_v29, 0.0  ;;  %v529_v25 = vmax.f32 %v405_v55, 0.0 }
 0x11e   : > { %768 = vmatpush3.xpose.msra.mxu1 %v543_v27 }
 0x11f   : > { %769 = vmatprep.subr.mxu1 %v558_v28 }
 0x122   : > { %770 = vmatpush3.xpose.msra.mxu1 %v542_v30 }
 0x123   : > { %771 = vmatprep.subr.mxu1 %v557_v33 }
 0x126   : > { %772 = vmatpush3.xpose.msra.mxu1 %v541_v35 }
 0x127   : > { %773 = vmatprep.subr.mxu1 %v556_v37 }
 0x12a   : > { %774 = vmatpush3.xpose.msra.mxu1 %v540_v39 }
 0x12b   : > { %775 = vmatprep.subr.mxu1 %v555_v41 }
 0x12e   : > { %776 = vmatpush3.xpose.msra.mxu1 %v539_v43 }
 0x12f   : > { %777 = vmatprep.subr.mxu1 %v554_v44 }
 0x132   : > { %778 = vmatpush3.xpose.msra.mxu1 %v538_v46 }
 0x133   : > { %779 = vmatprep.subr.mxu1 %v553_v49 }
 0x136   : > { %780 = vmatpush3.xpose.msra.mxu1 %v537_v54 }
 0x137   : > { %781 = vmatprep.subr.mxu1 %v552_v63 }
 0x13a   : > { %782 = vmatpush3.xpose.msra.mxu1 %v536_v2 }
 0x13b   : > { %783 = vmatprep.subr.mxu1 %v551_v3 }
 0x13e   : > { %784 = vmatpush3.xpose.msra.mxu1 %v535_v13 }
 0x13f   : > { %785 = vmatprep.subr.mxu1 %v550_v62 }
 0x142   : > { %786 = vmatpush3.xpose.msra.mxu1 %v534_v14 }
 0x143   : > { %787 = vmatprep.subr.mxu1 %v549_v15 }
 0x146   : > { %788 = vmatpush3.xpose.msra.mxu1 %v533_v16 }
 0x147   : > { %789 = vmatprep.subr.mxu1 %v548_v12 }
 0x14a   : > { %790 = vmatpush3.xpose.msra.mxu1 %v532_v60 }
 0x14b   : > { %791 = vmatprep.subr.mxu1 %v547_v20 }
 0x14e   : > { %792 = vmatpush3.xpose.msra.mxu1 %v531_v21 }
 0x14f   : > { %793 = vmatprep.subr.mxu1 %v546_v22 }
 0x152   : > { %794 = vmatpush3.xpose.msra.mxu1 %v530_v23 }
 0x153   : > { %795 = vmatprep.subr.mxu1 %v545_v24 }
 0x156   : > { %796 = vmatpush3.xpose.msra.mxu1 %v529_v25 }
 0x157   : > { %797 = vmatprep.subr.mxu1 %v544_v26 }
 0x15a   : > { %798 = vmatpush3.xpose.msra.mxu1 %v528_v8 }
 0x15d   : > { %800 = vmatmul.mubr.f32.vlgmr.msra.gmra.mxu1 %v1085_v50 }
 0x21d   : > { %v633_v6 = vpop.f32.mrf.mxu1 }
 0x21e   : > { %v634_v28 = vadd.f32 %v633_v6, %v565_v56 }
 0x21f   : > { %v635_v27 = vpop.f32.mrf.mxu1 }
 0x220   : > { %v636_v29 = vadd.f32 %v635_v27, %v565_v56 }
 0x222   : > { %v640_v53 = vcombine.low %v634_v28, %v636_v29 }
 0x224   : > { %642 = vst [vmem:[%s230_s7] sm:$0x77] %v640_v53 }
 0x225   : > { %893 = shalt.err (!%p890_p3)
}
 0x226   : > { %s894_s16 = scalar_lea.hbm %s656_s11, 128  ;;  %s898_s25 = scalar_lea.hbm %s1213_s5, 256 }
 0x227   : > { %p895_p4 = scmp.ne.s32.totalorder %s656_s11, %s894_s16  ;;  %p899_p9 = scmp.lt.s32.totalorder %s656_s11, %s1213_s5 }
 0x228   : > { %p900_p10 = scmp.lt.s32.totalorder %s898_s25, %s894_s16 }
 0x229   : > { %p896_p7 = pnand %p895_p4, %p1012_p5 }
 0x22a   : > { %p901_p11 = por %p900_p10, %p899_p9 }
 0x22b   : > { %p897_p8 = pneg %p896_p7 }
 0x22d   : > { %p902_p12 = pnand %p901_p11, %p897_p8 }
 0x22f   : > { %905 = shalt.err (!%p902_p12)
}
 0x230   : > { %837 = dma.vmem_to_hbm [thread:$0]  (%p1012_p5), %s659_s8, 128, %s656_s11, %s644_s12  }
 0x231 PF: > { %p843_p13 = scmp.ge.s32.totalorder %s940_s21, 2  ;;  %s670_s6 = sand.u32 1, %s928_s18  }
 0x232   : > { %s671_s7 = scalar_lea.sflag [#allocation3], %s670_s6 }
 0x233   : > { %p840_p0 = pnand %p843_p13, %p1016_p6 }
 0x235   : > { %p841_p1 = pneg %p840_p0 }
 0x237   : > { %923 = dma.done.wait (%p841_p1), %s671_s7, 128  }
 0x238   : > { %925 = vsyncadd (%p841_p1), %s671_s7, 4294967168  ;;  %p15_p2 = scmp.ge.s32.totalorder %s999_s24, 4   ;;  %s1216_s18 = smov %s932_s19 }
 0x239   : > { %s1217_s19 = smov %s936_s20  ;;  %s1218_s20 = smov %s1010_s27 }
 0x23a   : > { %s1219_s21 = smov %s999_s24  ;;  %17 = sbr.rel (!%p15_p2) target bundleno = 3 (0x3), region = 75 }
 0x23f   :  { %676 = vsyncpa [#allocation3], 1 }
 0x240   :  { %678 = vsyncpa [#allocation3 + $0x1], 1 }

</bundles_post_ra>
